<compile_context>
chip_gen: v7x
topology: tpu7x:2x2x1
jax: 0.10.0
libtpu: 0.0.40
codegen_flags: <defaults>
</compile_context>

<pallas_src>
import jax
import jax.numpy as jnp
from jax.experimental import pallas as pl
from jax.experimental.pallas import tpu as pltpu


def shrink_kernel(x_ref, w_ref, b_ref, o_ref):
    # x_ref: (tm, C) input dtype, w_ref: (C, O_pad) bf16, b_ref: (1, O_pad) f32,
    # o_ref: (tm, O_pad) out dtype.  Cast x to bf16 in-register, one MXU matmul,
    # f32 accumulation, bias add in f32, final cast on store.
    x_bf = x_ref[...].astype(jnp.bfloat16)
    acc = jnp.dot(x_bf, w_ref[...], preferred_element_type=jnp.float32)
    o_ref[...] = (acc + b_ref[...]).astype(o_ref.dtype)


def _pick_row_tile(M, block_m):
    """Row tile: multiple of 8, <= block_m, preferring an exact divisor of M."""
    cap = min(int(block_m), ((M + 7) // 8) * 8)
    cap = max(8, (cap // 8) * 8)
    if M % cap == 0:
        return cap
    if M % 8 == 0:
        # Look for a divisor of M; don't shrink below half the cap (keeps grid short).
        floor_ = max(8, cap // 2)
        cand = cap - 8
        while cand >= floor_:
            if M % cand == 0:
                return cand
            cand -= 8
    return cap  # fall back to padding


def temporal_model_base_forward(x, w_oc, bias, *, block_m=512):
    """TemporalModelBase forward (base path: permute -> shrink Conv1d(k=1) -> permute).

    x:    (B, T, in_features) with in_features == channels (C)
    w_oc: (O, C)  PyTorch Conv1d weight with the kernel dim (=1) squeezed out
    bias: (O,)
    returns (B, T, O) in x.dtype, O = num_joints_out * 3
    """
    B, T, C = x.shape
    O = w_oc.shape[0]
    out_dtype = x.dtype
    in_itemsize = jnp.dtype(x.dtype).itemsize
    out_itemsize = jnp.dtype(out_dtype).itemsize

    # ---- flatten (B, T) -> M and choose a row tile ----
    M = B * T
    tm = _pick_row_tile(M, block_m)
    grid_m = pl.cdiv(M, tm)
    M_pad = grid_m * tm

    # ---- lane-dense padded output width (multiple of 128) ----
    O_pad = pl.cdiv(O, 128) * 128

    # bf16 weights for the MXU; zero-pad the extra output lanes (weights & bias).
    w = jnp.zeros((C, O_pad), jnp.bfloat16).at[:, :O].set(
        jnp.transpose(w_oc, (1, 0)).astype(jnp.bfloat16))
    b = jnp.zeros((1, O_pad), jnp.float32).at[:, :O].set(bias.astype(jnp.float32))

    x2 = x.reshape(M, C)
    if M_pad != M:
        # Rare path: only when no divisor row-tile exists. Padded rows are discarded below.
        x2 = jnp.pad(x2, ((0, M_pad - M), (0, 0)))

    # Explicit VMEM budget: double-buffered x/out tiles + resident weights/bias,
    # 2x headroom, capped at 32 MiB so it is valid on v5e/v6e/v7x alike.
    vmem_need = 2 * (tm * C * in_itemsize + tm * O_pad * out_itemsize
                     + C * O_pad * 2 + O_pad * 4)
    vmem_limit = int(min(max(2 * vmem_need, 1 << 20), 32 << 20))

    cost = pl.CostEstimate(
        flops=2 * M_pad * C * O_pad,
        transcendentals=0,
        bytes_accessed=(M_pad * C * in_itemsize) + (C * O_pad * 2) + (O_pad * 4)
                       + (M_pad * O_pad * out_itemsize),
    )

    out = pl.pallas_call(
        shrink_kernel,
        out_shape=jax.ShapeDtypeStruct((M_pad, O_pad), out_dtype),
        grid_spec=pltpu.PrefetchScalarGridSpec(
            num_scalar_prefetch=0,
            grid=(grid_m,),
            in_specs=[
                pl.BlockSpec((tm, C), lambda i: (i, 0)),        # x row tile
                pl.BlockSpec((C, O_pad), lambda i: (0, 0)),     # weights (resident)
                pl.BlockSpec((1, O_pad), lambda i: (0, 0)),     # bias (resident)
            ],
            out_specs=pl.BlockSpec((tm, O_pad), lambda i: (i, 0)),
        ),
        compiler_params=pltpu.CompilerParams(
            dimension_semantics=("parallel",),
            vmem_limit_bytes=vmem_limit,
        ),
        cost_estimate=cost,
    )(x2, w, b)

    # Strip row/lane padding and restore (B, T, O).
    return out[:M, :O].reshape(B, T, O)


if __name__ == "__main__":
    # Small shapes consistent with the module:
    #   in_features == channels (the shrink head consumes `channels` input channels),
    #   num_joints_out * 3 output features.
    B = 2
    T = 16                 # number of frames (sequence length)
    channels = 32          # == in_features for the minimal base path
    num_joints_out = 17
    O = num_joints_out * 3

    key = jax.random.PRNGKey(0)
    kx, kw, kb = jax.random.split(key, 3)

    x = jax.random.normal(kx, (B, T, channels), dtype=jnp.float32)
    # Deterministic synthetic parameters for nn.Conv1d(channels, num_joints_out*3, 1)
    w_oc = jax.random.normal(kw, (O, channels), dtype=jnp.float32) * 0.05
    bias = jax.random.normal(kb, (O,), dtype=jnp.float32) * 0.01

    out = temporal_model_base_forward(x, w_oc, bias)
    out = jax.block_until_ready(out)

    # Reference check against the exact PyTorch semantics:
    # permute -> conv1d(k=1) -> permute  ==  einsum over channels (f32 reference).
    ref = jnp.einsum("btc,oc->bto", x, w_oc) + bias[None, None, :]
    assert out.shape == (B, T, O), out.shape
    # bf16 MXU operands with f32 accumulation -> loosen tolerance vs the f32 reference.
    assert jnp.allclose(out, ref, atol=1e-2, rtol=1e-2), float(jnp.max(jnp.abs(out - ref)))

    print("KERNEL_OK")
</pallas_src>

<mosaic_0001>
module attributes {stable_mosaic.version = 11 : i64} {
  func.func @shrink_kernel(%arg0: i32, %arg1: memref<32x32xf32, #tpu.memory_space<vmem>>, %arg2: memref<32x128xbf16, #tpu.memory_space<vmem>>, %arg3: memref<1x128xf32, #tpu.memory_space<vmem>>, %arg4: memref<32x128xf32, #tpu.memory_space<vmem>>) attributes {dimension_semantics = [#tpu.dimension_semantics<parallel>], iteration_bounds = array<i64: 1>, scalar_prefetch = 0 : i64, scratch_operands = 0 : i64, tpu.core_type = #tpu.core_type<tc>, window_params = [{transform_indices = @transform_0, window_bounds = array<i64: 32, 32>}, {pipeline_mode = #tpu.pipeline_mode<synchronous>, transform_indices = @transform_1, window_bounds = array<i64: 32, 128>}, {pipeline_mode = #tpu.pipeline_mode<synchronous>, transform_indices = @transform_2, window_bounds = array<i64: 1, 128>}, {transform_indices = @transform_3, window_bounds = array<i64: 32, 128>}]} {
    %c0 = arith.constant 0 : index
    %c0_0 = arith.constant 0 : index
    %0 = vector.load %arg1[%c0, %c0_0] : memref<32x32xf32, #tpu.memory_space<vmem>>, vector<32x32xf32>
    %1 = arith.truncf %0 : vector<32x32xf32> to vector<32x32xbf16>
    %c0_1 = arith.constant 0 : index
    %c0_2 = arith.constant 0 : index
    %2 = vector.load %arg2[%c0_1, %c0_2] : memref<32x128xbf16, #tpu.memory_space<vmem>>, vector<32x128xbf16>
    %cst = arith.constant dense<0.000000e+00> : vector<32x128xf32>
    %3 = tpu.matmul %1, %2, %cst {dimension_numbers = #tpu.dot_dimension_numbers<[1], [0], [0], [1], [0, 0, 1, 1], [], []>} : vector<32x32xbf16>, vector<32x128xbf16>, vector<32x128xf32> -> vector<32x128xf32>
    %c0_3 = arith.constant 0 : index
    %c0_4 = arith.constant 0 : index
    %4 = vector.load %arg3[%c0_3, %c0_4] : memref<1x128xf32, #tpu.memory_space<vmem>>, vector<1x128xf32>
    %5 = vector.broadcast %4 : vector<1x128xf32> to vector<32x128xf32>
    %6 = arith.addf %3, %5 : vector<32x128xf32>
    %c0_5 = arith.constant 0 : index
    %c0_6 = arith.constant 0 : index
    %7 = vector.load %arg4[%c0_5, %c0_6] : memref<32x128xf32, #tpu.memory_space<vmem>>, vector<32x128xf32>
    tpu.vector_store %arg4[%c0_5, %c0_6], %6 {strides = array<i32>} : memref<32x128xf32, #tpu.memory_space<vmem>>, vector<32x128xf32>,
    return
  }
  func.func @transform_0(%arg0: i32) -> (i32, i32) {
    %c0_i32 = arith.constant 0 : i32
    %c0_i32_0 = arith.constant 0 : i32
    return %arg0, %c0_i32 : i32, i32
  }
  func.func @transform_1(%arg0: i32) -> (i32, i32) {
    %c0_i32 = arith.constant 0 : i32
    %c0_i32_0 = arith.constant 0 : i32
    %c0_i32_1 = arith.constant 0 : i32
    return %c0_i32, %c0_i32_0 : i32, i32
  }
  func.func @transform_2(%arg0: i32) -> (i32, i32) {
    %c0_i32 = arith.constant 0 : i32
    %c0_i32_0 = arith.constant 0 : i32
    %c0_i32_1 = arith.constant 0 : i32
    return %c0_i32, %c0_i32_0 : i32, i32
  }
  func.func @transform_3(%arg0: i32) -> (i32, i32) {
    %c0_i32 = arith.constant 0 : i32
    %c0_i32_0 = arith.constant 0 : i32
    return %arg0, %c0_i32 : i32, i32
  }
}

</mosaic_0001>

<bundles_post_ra>
// kernel: tpu_custom_call.1
= control target key start
LH: loop header
LB: loop body
LE: loop exit
PB: predicated region body
PF: predicated region fallthrough
CT: control target
= control target key end

     0   :  { %8 = vsyncpa [#allocation3], 0  ;;  %s321_s0 = inlined_call_operand.hbm [shape: f32[32,32], index: 0, kind: input, shape index: {}]   ;;  %s322_s1 = inlined_call_operand.hbm [shape: bf16[32,128], index: 1, kind: input, shape index: {}]   ;;  %s323_s2 = inlined_call_operand.vmem [shape: f32[1,128], index: 2, kind: input, shape index: {}]   ;;  %s324_s3 = inlined_call_operand.hbm [shape: f32[32,128], index: 3, kind: output, shape index: {}]  }
   0x1   :  { %9 = vsyncpa [#allocation6], 0 }
   0x2   :  { %10 = vsyncpa [#allocation4], 0  ;;  %s249_s12 = smov [#allocation2]   ;;  %s177_s16 = scalar_lea.hbm %s321_s0, 512 }
   0x3   :  { %s16_s13 = sshll.u32 %s249_s12, 4  ;;  %p178_p0 = scmp.ne.s32.totalorder %s321_s0, %s177_s16  ;;  %s17_s13 = int_to_ptr.vmem [resolvable:$true] %s16_s13 }
   0x4   :  { %p181_p1 = scmp.lt.u32.totalorder %s177_s16, %s321_s0 }
   0x6   :  { %p183_p2 = pnand %p181_p1, %p178_p0 }
   0x8   :  { %186 = shalt.err (!%p183_p2)
}
   0x9   :  { %s187_s21 = scalar_lea.vmem %s17_s13, 512  ;;  %p192_p4 = scmp.lt.s32.totalorder %s17_s13, %s17_s13 }
   0xa   :  { %p188_p3 = scmp.ne.s32.totalorder %s17_s13, %s187_s21  ;;  %p193_p5 = scmp.lt.s32.totalorder %s187_s21, %s187_s21 }
   0xc   :  { %p194_p6 = por %p193_p5, %p192_p4 }
   0xe   :  { %p195_p7 = pnand %p194_p6, %p188_p3 }
  0x10   :  { %198 = shalt.err (!%p195_p7)
}
  0x11   :  { %s250_s22 = smov 128   ;;  %s251_s23 = smov 8  }
  0x12   :  { %22 = dma.hbm_to_vmem [thread:$0]  %s321_s0, 512, %s17_s13, [#allocation3], %s250_s22, %s250_s22, %s251_s23  }
  0x13   :  { %s252_s26 = smov [#allocation5]   ;;  %s199_s30 = scalar_lea.hbm %s322_s1, 256 }
  0x14   :  { %s28_s27 = sshll.u32 %s252_s26, 4  ;;  %p200_p8 = scmp.ne.s32.totalorder %s322_s1, %s199_s30  ;;  %s29_s27 = int_to_ptr.vmem [resolvable:$true] %s28_s27 }
  0x15   :  { %p203_p9 = scmp.lt.u32.totalorder %s199_s30, %s322_s1 }
  0x17   :  { %p205_p10 = pnand %p203_p9, %p200_p8 }
  0x19   :  { %208 = shalt.err (!%p205_p10)
}
  0x1a   :  { %s209_s8 = scalar_lea.vmem %s29_s27, 256  ;;  %p214_p12 = scmp.lt.s32.totalorder %s29_s27, %s29_s27 }
  0x1b   :  { %p210_p11 = scmp.ne.s32.totalorder %s29_s27, %s209_s8  ;;  %p215_p13 = scmp.lt.s32.totalorder %s209_s8, %s209_s8 }
  0x1d   :  { %p216_p0 = por %p215_p13, %p214_p12 }
  0x1f   :  { %p217_p1 = pnand %p216_p0, %p210_p11 }
  0x21   :  { %220 = shalt.err (!%p217_p1)
}
  0x22   :  { %s253_s0 = smov 64   ;;  %s254_s9 = smov 4  }
  0x23   :  { %34 = dma.hbm_to_vmem [thread:$0]  %s322_s1, 256, %s29_s27, [#allocation6], %s253_s0, %s253_s0, %s254_s9  }
  0x24   :  { %243 = dma.done.wait [#allocation3], 512  }
  0x25   :  { %244 = vsyncadd [#allocation3], 4294966784 }
  0x26   :  { %245 = dma.done.wait [#allocation6], 256  }
  0x27   :  { %246 = vsyncadd [#allocation6], 4294967040  ;;  %v175_v0 = vld [vmem:[#allocation5] sm:$0xff]   ;;  %v176_v1 = vld [vmem:[#allocation5 + $0x8] sm:$0xff]   ;;  %vm73_vm0 = vcmask 261120   ;;  %s255_s13 = smov [#allocation7]  }
  0x28   :  { %160 = vmatprep.subr.bf16.mxu0 %v175_v0  ;;  %v44_v2 = vld [vmem:[#allocation2] sm:$0xff]  ;;  %v45_v3 = vld [vmem:[#allocation2 + $0x8] sm:$0xff]  ;;  %v46_v5 = vld [vmem:[#allocation2 + $0x10] sm:$0xff]  ;;  %s138_s14 = sshll.u32 %s255_s13, 4  ;;  %s139_s14 = int_to_ptr.vmem [resolvable:$true] %s138_s14 }
  0x29   :  { %161 = vmatpush3.bf16.msra.mxu0 %v175_v0  ;;  %v48_v4 = vpack.c.bf16 %v45_v3, %v44_v2  ;;  %v47_v6 = vld [vmem:[#allocation2 + $0x18] sm:$0xff]  ;;  %v151_v8 = vld [vmem:[%s323_s2] ss:$0 sm:$0xff]  ;;  %s221_s15 = scalar_lea.vmem %s139_s14, 512  ;;  %p226_p3 = scmp.lt.s32.totalorder %s139_s14, %s139_s14 }
  0x2a   :  { %162 = vmatprep.subr.bf16.mxu0 %v176_v1  ;;  %v49_v7 = vpack.c.bf16 %v47_v6, %v46_v5  ;;  %p222_p2 = scmp.ne.s32.totalorder %s139_s14, %s221_s15  ;;  %p227_p4 = scmp.lt.s32.totalorder %s221_s15, %s221_s15 }
  0x2b   :  { %164 = vmatprep.mubr.msk.bf16.mxu0 %vm73_vm0, %v48_v4 }
  0x2c   :  { %p228_p5 = por %p227_p4, %p226_p3 }
  0x2d   :  { %163 = vmatpush3.bf16.msra.mxu0 %v176_v1 }
  0x2e   :  { %p229_p6 = pnand %p228_p5, %p222_p2 }
  0x30   :  { %165 = vmatmul.mubr.msk.bf16.vlgmr.msra.gmra.mrb[0].mxu0 %vm73_vm0, %v49_v7 }
 0x103   :  { %v166_v9 = vpop.f32.mrb[0].mxu0 }
 0x104   :  { %v123_v10 = vadd.f32 %v166_v9, %v151_v8  ;;  %v114_v11 = vpop.f32.mrb[1].mxu0 }
 0x105   :  { %v115_v12 = vadd.f32 %v151_v8, %v114_v11  ;;  %v167_v13 = vpop.f32.mrb[2].mxu0 }
 0x106   :  { %131 = vst [vmem:[#allocation7 + $0x10] sm:$0xff] %v123_v10  ;;  %v126_v14 = vadd.f32 %v167_v13, %v151_v8  ;;  %v117_v15 = vpop.f32.mrb[3].mxu0 }
 0x107   :  { %129 = vst [vmem:[#allocation7] sm:$0xff] %v115_v12  ;;  %v118_v16 = vadd.f32 %v151_v8, %v117_v15 }
 0x108   :  { %132 = vst [vmem:[#allocation7 + $0x18] sm:$0xff] %v126_v14 }
 0x109   :  { %130 = vst [vmem:[#allocation7 + $0x8] sm:$0xff] %v118_v16 }
 0x10a   :  { %232 = shalt.err (!%p229_p6)
}
 0x10b   :  { %s233_s17 = scalar_lea.hbm %s324_s3, 512 }
 0x10c   :  { %p234_p7 = scmp.ne.s32.totalorder %s324_s3, %s233_s17  ;;  %p237_p8 = scmp.lt.u32.totalorder %s233_s17, %s324_s3 }
 0x10e   :  { %p239_p9 = pnand %p237_p8, %p234_p7 }
 0x110   :  { %242 = shalt.err (!%p239_p9)
}
 0x111   :  { %144 = dma.vmem_to_hbm [thread:$0]  %s139_s14, 512, %s324_s3, [#allocation4], %s250_s22, %s250_s22, %s251_s23  }
 0x112   :  { %247 = dma.done.wait [#allocation4], 512  }
 0x113   :  { %248 = vsyncadd [#allocation4], 4294966784 }
 0x114   :  { %148 = vsyncpa [#allocation3], 1 }
 0x115   :  { %149 = vsyncpa [#allocation6], 1 }
 0x116   :  { %150 = vsyncpa [#allocation4], 1 }

</bundles_post_ra>
